<compile_context>
chip_gen: v6e
topology: v6e:2x2x1
jax: 0.10.0
libtpu: 0.0.40
codegen_flags: <defaults>
</compile_context>

<pallas_src>
import jax
import jax.numpy as jnp
from jax.experimental import pallas as pl
from jax.experimental.pallas import tpu as pltpu

_SUB = 32                         # dtype-agnostic sublane rounding (f32/bf16/int8)
_TILE_BYTES = 4 * 1024 * 1024     # ~4 MiB x tile per grid step
_VMEM_BUDGET = 24 * 1024 * 1024   # 2x in + 2x out double-buffers must fit here
_VMEM_LIMIT = 32 * 1024 * 1024    # scoped-VMEM limit passed to Mosaic
_BYPASS_BYTES = 4 * 1024 * 1024   # below this, plain XLA multiply wins


def _mask_mul_kernel(x_ref, m_ref, o_ref):
    # x_ref: (bt, L) rows of the flattened input, m_ref: (1, L) flattened mask.
    # Pure VPU elementwise multiply with row-broadcast of the mask; the kernel
    # is strictly HBM-streaming-bound, so no compute-side tuning is needed.
    o_ref[...] = x_ref[...] * m_ref[...]


def _pick_row_block(R: int, bytes_per_row: int) -> int:
    """Row-block size: ~4 MiB tiles, VMEM-budget-clamped, sublane-rounded,
    and guaranteeing >= 2 grid steps when there is enough work to split."""
    target_rows = max(1, _TILE_BYTES // bytes_per_row)
    budget_rows = max(1, _VMEM_BUDGET // (4 * bytes_per_row))
    bt = min(target_rows, budget_rows)

    if bt >= R:
        # Whole array fits in one tile. Full-extent blocks are always legal,
        # but split into two steps when possible so multi-core parts (v7x)
        # shard the parallel row axis across both TensorCores.
        if R > 2 * _SUB:
            half = pl.cdiv(R, 2)
            bt = ((half + _SUB - 1) // _SUB) * _SUB  # round_up(cdiv(R,2), 32)
        else:
            bt = R
    else:
        # Tiled path: block rows must be a multiple of the sublane packing.
        sub = _SUB if bt >= _SUB else 8
        bt = max(8, (bt // sub) * sub)
    return bt


def dropout_layer_forward(x: jax.Array, mask: jax.Array,
                          force_pallas: bool = False) -> jax.Array:
    """x: (..., P, H); mask: (P, H).  Returns x * mask (mask broadcast over
    leading dims), matching DropoutLayer.forward."""
    P, H = mask.shape
    assert x.shape[-2:] == (P, H), (
        f"trailing dims of x should be {(P, H)} but got {x.shape[-2:]}")

    out_dtype = jnp.result_type(x.dtype, mask.dtype)  # PyTorch-style promotion
    orig_shape = x.shape
    L = P * H
    x2 = x.reshape(-1, L).astype(out_dtype)
    R = x2.shape[0]
    m2 = mask.reshape(1, L).astype(out_dtype)

    itemsize = jnp.dtype(out_dtype).itemsize
    bytes_per_row = L * itemsize
    total_bytes = R * bytes_per_row

    # Small-input bypass: for the module's actual shapes (a few KiB) the fixed
    # pallas_call launch dominates; XLA fuses this multiply for free.
    if total_bytes < _BYPASS_BYTES and not force_pallas:
        return (x2 * m2).reshape(orig_shape).astype(out_dtype)

    bt = _pick_row_block(R, bytes_per_row)
    grid_rows = pl.cdiv(R, bt)

    out2 = pl.pallas_call(
        _mask_mul_kernel,
        out_shape=jax.ShapeDtypeStruct((R, L), out_dtype),
        grid=(grid_rows,),
        in_specs=[
            pl.BlockSpec((bt, L), lambda r: (r, 0)),   # row tile of x
            pl.BlockSpec((1, L), lambda r: (0, 0)),    # mask, VMEM-resident
        ],
        out_specs=pl.BlockSpec((bt, L), lambda r: (r, 0)),
        # NOTE: input_output_aliases={0: 0} would halve HBM footprint when the
        # caller donates x; left off by default to avoid donation requirements.
        compiler_params=pltpu.CompilerParams(
            dimension_semantics=("parallel",),
            vmem_limit_bytes=_VMEM_LIMIT,
        ),
    )(x2, m2)

    return out2.reshape(orig_shape)


if __name__ == "__main__":
    # Shapes implied by the module: hidden_dim=32, n_particle=4; add batch=2.
    batch, n_particle, hidden_dim = 2, 4, 32

    key = jax.random.PRNGKey(0)
    k_small, k_big = jax.random.split(key)

    # Deterministic parameter init, exactly as in __init__: mask = ones.
    mask = jnp.ones((n_particle, hidden_dim), dtype=jnp.float32)
    # TODO(synk): update()/get() are host-side mask bookkeeping; no kernel needed.

    # 1) Module's actual small shape: goes through the fused-XLA bypass.
    x_small = jax.random.normal(
        k_small, (batch, n_particle, hidden_dim), dtype=jnp.float32)
    out_small = jax.block_until_ready(dropout_layer_forward(x_small, mask))
    assert out_small.shape == x_small.shape
    assert jnp.allclose(out_small, x_small * mask), "small-shape mismatch"

    # 2) Same small shape, forced through the Pallas kernel (full-extent block).
    out_small_pk = jax.block_until_ready(
        dropout_layer_forward(x_small, mask, force_pallas=True))
    assert jnp.allclose(out_small_pk, x_small * mask), "forced-pallas mismatch"

    # 3) Larger batch to exercise the tiled / multi-step pipeline path.
    big_batch = 16384  # 8 MiB f32 -> 2 grid steps of ~4 MiB each
    x_big = jax.random.normal(
        k_big, (big_batch, n_particle, hidden_dim), dtype=jnp.float32)
    out_big = jax.block_until_ready(dropout_layer_forward(x_big, mask))
    assert out_big.shape == x_big.shape
    assert jnp.allclose(out_big, x_big * mask), "tiled-path mismatch"

    print("KERNEL_OK")
</pallas_src>

<mosaic_0001>
module attributes {stable_mosaic.version = 11 : i64} {
  func.func @_mask_mul_kernel(%arg0: i32, %arg1: memref<2x128xf32, #tpu.memory_space<vmem>>, %arg2: memref<1x128xf32, #tpu.memory_space<vmem>>, %arg3: memref<2x128xf32, #tpu.memory_space<vmem>>) attributes {dimension_semantics = [#tpu.dimension_semantics<parallel>], iteration_bounds = array<i64: 1>, scalar_prefetch = 0 : i64, scratch_operands = 0 : i64, tpu.core_type = #tpu.core_type<tc>, window_params = [{transform_indices = @transform_0, window_bounds = array<i64: 2, 128>}, {pipeline_mode = #tpu.pipeline_mode<synchronous>, transform_indices = @transform_1, window_bounds = array<i64: 1, 128>}, {transform_indices = @transform_2, window_bounds = array<i64: 2, 128>}]} {
    %c0 = arith.constant 0 : index
    %c0_0 = arith.constant 0 : index
    %0 = vector.load %arg1[%c0, %c0_0] : memref<2x128xf32, #tpu.memory_space<vmem>>, vector<2x128xf32>
    %c0_1 = arith.constant 0 : index
    %c0_2 = arith.constant 0 : index
    %1 = vector.load %arg2[%c0_1, %c0_2] : memref<1x128xf32, #tpu.memory_space<vmem>>, vector<1x128xf32>
    %2 = vector.broadcast %1 : vector<1x128xf32> to vector<2x128xf32>
    %3 = arith.mulf %0, %2 : vector<2x128xf32>
    %c0_3 = arith.constant 0 : index
    %c0_4 = arith.constant 0 : index
    %4 = vector.load %arg3[%c0_3, %c0_4] : memref<2x128xf32, #tpu.memory_space<vmem>>, vector<2x128xf32>
    tpu.vector_store %arg3[%c0_3, %c0_4], %3 {strides = array<i32>} : memref<2x128xf32, #tpu.memory_space<vmem>>, vector<2x128xf32>,
    return
  }
  func.func @transform_0(%arg0: i32) -> (i32, i32) {
    %c0_i32 = arith.constant 0 : i32
    %c0_i32_0 = arith.constant 0 : i32
    return %arg0, %c0_i32 : i32, i32
  }
  func.func @transform_1(%arg0: i32) -> (i32, i32) {
    %c0_i32 = arith.constant 0 : i32
    %c0_i32_0 = arith.constant 0 : i32
    %c0_i32_1 = arith.constant 0 : i32
    return %c0_i32, %c0_i32_0 : i32, i32
  }
  func.func @transform_2(%arg0: i32) -> (i32, i32) {
    %c0_i32 = arith.constant 0 : i32
    %c0_i32_0 = arith.constant 0 : i32
    return %arg0, %c0_i32 : i32, i32
  }
}

</mosaic_0001>

<bundles_post_ra>
// kernel: tpu_custom_call.1
= control target key start
LH: loop header
LB: loop body
LE: loop exit
PB: predicated region body
PF: predicated region fallthrough
CT: control target
= control target key end

     0   :  { %7 = vsyncpa [#allocation3], 0  ;;  %s122_s0 = inlined_call_operand.hbm [shape: f32[2,128], index: 0, kind: input, shape index: {}]   ;;  %s123_s1 = inlined_call_operand.vmem [shape: f32[1,128], index: 1, kind: input, shape index: {}]   ;;  %s124_s2 = inlined_call_operand.hbm [shape: f32[2,128], index: 2, kind: output, shape index: {}]  }
   0x1   :  { %8 = vsyncpa [#allocation4], 0  ;;  %s96_s9 = smov [#allocation2]  }
   0x2   :  { %s15_s10 = sshll.u32 %s96_s9, 4  ;;  %s16_s10 = int_to_ptr.vmem [resolvable:$true] %s15_s10 }
   0x3   :  { %s60_s11 = scalar_lea.vmem %s16_s10, 32  ;;  %p65_p1 = scmp.lt.s32.totalorder %s16_s10, %s16_s10 }
   0x4   :  { %p61_p0 = scmp.ne.s32.totalorder %s16_s10, %s60_s11  ;;  %p66_p2 = scmp.lt.s32.totalorder %s60_s11, %s60_s11 }
   0x6   :  { %p67_p3 = por %p66_p2, %p65_p1 }
   0x8   :  { %p68_p4 = pnand %p67_p3, %p61_p0 }
   0xa   :  { %71 = shalt.err (!%p68_p4)
}
   0xb   :  { %18 = dma.hbm_to_vmem [thread:$0]  %s122_s0, 32, %s16_s10, [#allocation3]  }
   0xc   :  { %92 = dma.done.wait [#allocation3], 32  }
   0xd   :  { %93 = vsyncadd [#allocation3], 4294967264  ;;  %s97_s14 = smov [#allocation5]   ;;  %v24_v0 = vld [vmem:[#allocation2] sm:$0x3] }
   0xe   :  { %s40_s15 = sshll.u32 %s97_s14, 4  ;;  %v49_v1 = vld [vmem:[%s123_s1] ss:$0 sm:$0xff]  ;;  %s41_s15 = int_to_ptr.vmem [resolvable:$true] %s40_s15 }
   0xf   :  { %v32_v2 = vmul.f32 %v49_v1, %v24_v0  ;;  %s72_s18 = scalar_lea.vmem %s41_s15, 32  ;;  %p77_p6 = scmp.lt.s32.totalorder %s41_s15, %s41_s15 }
  0x10   :  { %p73_p5 = scmp.ne.s32.totalorder %s41_s15, %s72_s18  ;;  %p78_p7 = scmp.lt.s32.totalorder %s72_s18, %s72_s18 }
  0x11   :  { %33 = vst [vmem:[#allocation5] sm:$0x3] %v32_v2 }
  0x12   :  { %p79_p8 = por %p78_p7, %p77_p6 }
  0x14   :  { %p80_p9 = pnand %p79_p8, %p73_p5 }
  0x16   :  { %83 = shalt.err (!%p80_p9)
}
  0x17   :  { %43 = dma.vmem_to_hbm [thread:$0]  %s41_s15, 32, %s124_s2, [#allocation4]  }
  0x18   :  { %94 = dma.done.wait [#allocation4], 32  }
  0x19   :  { %95 = vsyncadd [#allocation4], 4294967264 }
  0x1a   :  { %47 = vsyncpa [#allocation3], 1 }
  0x1b   :  { %48 = vsyncpa [#allocation4], 1 }

</bundles_post_ra>
